<compile_context>
chip_gen: v7x
topology: tpu7x:2x2x1
jax: 0.10.0
libtpu: 0.0.40
codegen_flags: <defaults>
</compile_context>

<pallas_src>
import functools
import numpy as np
import jax
import jax.numpy as jnp
from jax.experimental import pallas as pl
from jax.experimental.pallas import tpu as pltpu


def build_pe(d_model: int, max_len: int = 500, dtype=np.float32) -> np.ndarray:
    """Sinusoidal positional-encoding table, shape (max_len, d_model), host numpy."""
    position = np.arange(0, max_len, dtype=np.float32)[:, None]            # (max_len, 1)
    div_term = np.exp(np.arange(0, d_model, 2, dtype=np.float32)
                      * (-np.log(10000.0) / d_model))                      # (ceil(d/2),)
    pe = np.zeros((max_len, d_model), dtype=np.float32)
    pe[:, 0::2] = np.sin(position * div_term)
    if d_model % 2 == 1:
        pe[:, 1::2] = np.cos(position * div_term[: pe[:, 1::2].shape[1]])
    else:
        pe[:, 1::2] = np.cos(position * div_term)
    return pe.astype(dtype)


def _pos_enc_kernel(x_ref, pe_ref, o_ref):
    # x_ref: (tb, tc) tile of the flattened (B, S*D) input.
    # pe_ref: (1, tc) tile of the flattened pe row, broadcast over the batch rows.
    o_ref[...] = x_ref[...] + pe_ref[...]


def _round_up(v: int, m: int) -> int:
    return -(-v // m) * m


@functools.lru_cache(maxsize=None)
def _tpu_generation() -> str:
    try:
        kind = jax.devices()[0].device_kind.lower()
    except Exception:
        kind = ""
    if "v7" in kind or "tpu7" in kind:
        return "v7x"
    if "v6" in kind:
        return "v6e"
    if "v5" in kind:
        return "v5e"
    return "other"


def _tuning():
    gen = _tpu_generation()
    if gen == "v7x":
        # 3.2 TB/s HBM -> amortize fixed per-step cost with larger blocks, but
        # only 64 MiB physical VMEM per TC -> keep padded footprint modest.
        return dict(target_block_bytes=4 << 20, vmem_budget=24 << 20, vmem_cap=44 << 20)
    # v5e / v6e: 128 MiB physical VMEM; explicit limit avoids the 16/32 MiB default.
    return dict(target_block_bytes=2 << 20, vmem_budget=28 << 20, vmem_cap=64 << 20)


def _vmem_needed(tb: int, tc: int, itemsize: int, pack: int) -> int:
    """Padded, double-buffered VMEM footprint of the x, out and pe blocks."""
    ptb = _round_up(tb, pack)      # sublane padding of short row tiles
    ptc = _round_up(tc, 128)       # lane padding
    # 2 buffers each: x tile + out tile (ptb, ptc) and pe tile padded to `pack` rows.
    return 2 * itemsize * ptc * (2 * ptb + pack)


def _choose_tiles(B: int, N: int, itemsize: int, target_block_bytes: int,
                  vmem_budget: int, lane_cap: int = 32768):
    """Pick (row_tile, col_tile, pack) for the flattened (B, N) view."""
    pack = max(8, 32 // itemsize)          # sublane pack: 8 f32, 16 bf16, 32 i8/fp8

    # Column tile: lane-dense multiple of 128 (ragged edge blocks are allowed).
    if N % 128 == 0:
        tc = min(N, lane_cap)
    elif N <= lane_cap:
        tc = N                              # full extent (allowed when unaligned)
    else:
        tc = (lane_cap // 128) * 128        # tiled with a ragged edge block

    # Row tile: pack-aligned, sized toward the block-byte target.
    if B <= pack:
        tb = B                              # full extent
    else:
        rows = max(pack, target_block_bytes // max(1, tc * itemsize))
        tb = max(pack, min((B // pack) * pack, (rows // pack) * pack))

    # Small-batch path: rows are exhausted but the block is still tiny -> widen
    # the column tile toward the target instead of leaving a 10s-of-KiB block.
    if tb * tc * itemsize < target_block_bytes and tc < N:
        want = max(tc, target_block_bytes // max(1, tb * itemsize))
        want = max(128, (want // 128) * 128)
        if N % 128 == 0:
            tc = min(N, max(tc, want))
        else:
            tc = min(max(128, (N // 128) * 128), max(tc, want))

    # Shrink until the padded double-buffered footprint fits the VMEM budget.
    while _vmem_needed(tb, tc, itemsize, pack) > vmem_budget:
        if tc >= 256:
            tc = max(128, ((tc // 2) // 128) * 128)
        elif tb > pack:
            tb = max(pack, ((tb // 2) // pack) * pack)
        else:
            break
    return tb, tc, pack


def _ensure_two_blocks(B: int, N: int, tb: int, tc: int, pack: int, itemsize: int,
                       min_bytes: int = 256 << 10):
    """Guarantee >= 2 grid blocks for non-trivial tensors so v7x megacore
    sharding (2 TensorCores) actually gets work on both cores."""
    if B * N * itemsize < min_bytes:
        return tb, tc
    if pl.cdiv(B, tb) * pl.cdiv(N, tc) >= 2:
        return tb, tc
    if N >= 256:
        tc = max(128, (pl.cdiv(N, 2) // 128) * 128)
    elif B >= 2 * pack:
        tb = max(pack, ((B // 2) // pack) * pack)
    return tb, tc


def _pos_enc_2d(x2: jnp.ndarray, pe_flat: jnp.ndarray, *, donate_x: bool = False):
    """x2: (B, N) flattened input; pe_flat: (1, N) device constant."""
    B, N = x2.shape
    itemsize = np.dtype(x2.dtype).itemsize
    cfg = _tuning()

    tb, tc, pack = _choose_tiles(B, N, itemsize,
                                 cfg["target_block_bytes"], cfg["vmem_budget"])
    tb, tc = _ensure_two_blocks(B, N, tb, tc, pack, itemsize)

    # Columns OUTER, rows inner: the pe block index depends only on the column
    # block, so it is unchanged across the inner row sweep and not re-DMA'd.
    grid = (pl.cdiv(N, tc), pl.cdiv(B, tb))

    needed = _vmem_needed(tb, tc, itemsize, pack)
    vmem_limit = int(min(max(needed + (2 << 20), 4 << 20), cfg["vmem_cap"]))

    return pl.pallas_call(
        _pos_enc_kernel,
        out_shape=jax.ShapeDtypeStruct((B, N), x2.dtype),
        grid_spec=pltpu.PrefetchScalarGridSpec(
            num_scalar_prefetch=0,
            grid=grid,
            in_specs=[
                pl.BlockSpec((tb, tc), lambda j, i: (i, j)),   # x tile
                pl.BlockSpec((1, tc), lambda j, i: (0, j)),    # pe, row-broadcast
            ],
            out_specs=pl.BlockSpec((tb, tc), lambda j, i: (i, j)),
        ),
        compiler_params=pltpu.CompilerParams(
            dimension_semantics=("parallel", "parallel"),
            vmem_limit_bytes=vmem_limit,
        ),
        input_output_aliases=({0: 0} if donate_x else {}),
    )(x2, pe_flat)


class PositionalEncoding:
    """Pallas-backed equivalent of the PyTorch PositionalEncoding module."""

    def __init__(self, d_model: int, max_len: int = 500, dtype=jnp.float32):
        self.d_model = int(d_model)
        self.max_len = int(max_len)
        self.dtype = jnp.dtype(dtype)
        # "register_buffer": deterministic host table in the model dtype.
        self.pe = build_pe(self.d_model, self.max_len, np.dtype(self.dtype))
        self._pe_flat_cache = {}   # seq_len -> (1, S*D) device constant

    def _pe_flat(self, S: int) -> jnp.ndarray:
        dev = self._pe_flat_cache.get(S)
        if dev is None:
            dev = jax.device_put(
                np.ascontiguousarray(self.pe[:S].reshape(1, S * self.d_model)))
            self._pe_flat_cache[S] = dev
        return dev

    def __call__(self, x: jnp.ndarray, donate_x: bool = False) -> jnp.ndarray:
        B, S, D = x.shape
        if D != self.d_model:
            raise ValueError(f"d_model mismatch: x has {D}, module has {self.d_model}")
        if S > self.max_len:
            raise ValueError(f"sequence length {S} exceeds max_len {self.max_len}")
        x2 = x.reshape(B, S * D)   # layout-preserving trailing-dim collapse
        out2 = _pos_enc_2d(x2, self._pe_flat(S), donate_x=donate_x)
        return out2.reshape(B, S, D)


if __name__ == "__main__":
    B, S, D = 2, 8, 32
    max_len = 500

    key = jax.random.PRNGKey(0)
    x = jax.random.normal(key, (B, S, D), dtype=jnp.float32)

    module = PositionalEncoding(D, max_len=max_len, dtype=jnp.float32)
    out = module(x)
    out = jax.block_until_ready(out)

    # Reference check (mirrors the PyTorch forward: x + pe[:, :S]).
    ref = np.asarray(x) + module.pe[None, :S, :].astype(np.float32)
    np.testing.assert_allclose(np.asarray(out), ref, rtol=1e-6, atol=1e-6)

    print("KERNEL_OK")
</pallas_src>

<mosaic_0001>
module attributes {stable_mosaic.version = 11 : i64} {
  func.func @_pos_enc_kernel(%arg0: i32, %arg1: i32, %arg2: memref<2x256xf32, #tpu.memory_space<vmem>>, %arg3: memref<1x256xf32, #tpu.memory_space<vmem>>, %arg4: memref<2x256xf32, #tpu.memory_space<vmem>>) attributes {dimension_semantics = [#tpu.dimension_semantics<parallel>, #tpu.dimension_semantics<parallel>], iteration_bounds = array<i64: 1, 1>, scalar_prefetch = 0 : i64, scratch_operands = 0 : i64, tpu.core_type = #tpu.core_type<tc>, window_params = [{transform_indices = @transform_0, window_bounds = array<i64: 2, 256>}, {transform_indices = @transform_1, window_bounds = array<i64: 1, 256>}, {transform_indices = @transform_2, window_bounds = array<i64: 2, 256>}]} {
    %c0 = arith.constant 0 : index
    %c0_0 = arith.constant 0 : index
    %0 = vector.load %arg2[%c0, %c0_0] : memref<2x256xf32, #tpu.memory_space<vmem>>, vector<2x256xf32>
    %c0_1 = arith.constant 0 : index
    %c0_2 = arith.constant 0 : index
    %1 = vector.load %arg3[%c0_1, %c0_2] : memref<1x256xf32, #tpu.memory_space<vmem>>, vector<1x256xf32>
    %2 = vector.broadcast %1 : vector<1x256xf32> to vector<2x256xf32>
    %3 = arith.addf %0, %2 : vector<2x256xf32>
    %c0_3 = arith.constant 0 : index
    %c0_4 = arith.constant 0 : index
    %4 = vector.load %arg4[%c0_3, %c0_4] : memref<2x256xf32, #tpu.memory_space<vmem>>, vector<2x256xf32>
    tpu.vector_store %arg4[%c0_3, %c0_4], %3 {strides = array<i32>} : memref<2x256xf32, #tpu.memory_space<vmem>>, vector<2x256xf32>,
    return
  }
  func.func @transform_0(%arg0: i32, %arg1: i32) -> (i32, i32) {
    %c0_i32 = arith.constant 0 : i32
    return %arg1, %arg0 : i32, i32
  }
  func.func @transform_1(%arg0: i32, %arg1: i32) -> (i32, i32) {
    %c0_i32 = arith.constant 0 : i32
    %c0_i32_0 = arith.constant 0 : i32
    return %c0_i32, %arg0 : i32, i32
  }
  func.func @transform_2(%arg0: i32, %arg1: i32) -> (i32, i32) {
    %c0_i32 = arith.constant 0 : i32
    return %arg1, %arg0 : i32, i32
  }
}

</mosaic_0001>

<bundles_post_ra>
// kernel: tpu_custom_call.1
= control target key start
LH: loop header
LB: loop body
LE: loop exit
PB: predicated region body
PF: predicated region fallthrough
CT: control target
= control target key end

     0   :  { %7 = vsyncpa [#allocation3], 0  ;;  %s157_s0 = inlined_call_operand.hbm [shape: f32[2,256], index: 0, kind: input, shape index: {}]   ;;  %s158_s1 = inlined_call_operand.vmem [shape: f32[1,256], index: 1, kind: input, shape index: {}]   ;;  %s159_s2 = inlined_call_operand.hbm [shape: f32[2,256], index: 2, kind: output, shape index: {}]  }
   0x1   :  { %8 = vsyncpa [#allocation4], 0  ;;  %s112_s9 = smov [#allocation2]   ;;  %s64_s13 = scalar_lea.hbm %s157_s0, 64 }
   0x2   :  { %s15_s10 = sshll.u32 %s112_s9, 4  ;;  %p65_p0 = scmp.ne.s32.totalorder %s157_s0, %s64_s13  ;;  %s16_s10 = int_to_ptr.vmem [resolvable:$true] %s15_s10 }
   0x3   :  { %p68_p1 = scmp.lt.u32.totalorder %s64_s13, %s157_s0 }
   0x5   :  { %p70_p2 = pnand %p68_p1, %p65_p0 }
   0x7   :  { %73 = shalt.err (!%p70_p2)
}
   0x8   :  { %s74_s18 = scalar_lea.vmem %s16_s10, 64  ;;  %p79_p4 = scmp.lt.s32.totalorder %s16_s10, %s16_s10 }
   0x9   :  { %p75_p3 = scmp.ne.s32.totalorder %s16_s10, %s74_s18  ;;  %p80_p5 = scmp.lt.s32.totalorder %s74_s18, %s74_s18 }
   0xb   :  { %p81_p6 = por %p80_p5, %p79_p4 }
   0xd   :  { %p82_p7 = pnand %p81_p6, %p75_p3 }
   0xf   :  { %85 = shalt.err (!%p82_p7)
}
  0x10   :  { %18 = dma.hbm_to_vmem [thread:$0]  %s157_s0, 64, %s16_s10, [#allocation3]  }
  0x11   :  { %108 = dma.done.wait [#allocation3], 64  }
  0x12   :  { %109 = vsyncadd [#allocation3], 4294967232  ;;  %v27_v0 = vlaneseq  ;;  %v113_v1 = vmov 1983009808   ;;  %v25_v7 = vld [vmem:[%s158_s1] sm:$0x3] }
  0x13   :  { %v37_v2 = vunpack.c.l.s4 %v113_v1  ;;  %v24_v12 = vld [vmem:[#allocation2] sm:$0xf]  ;;  %s114_s23 = smov [#allocation5]  }
  0x14   :  { %v28_v3 = vshrl.u32 %v27_v0, 7  ;;  %s52_s0 = sshll.u32 %s114_s23, 4  ;;  %s53_s0 = int_to_ptr.vmem [resolvable:$true] %s52_s0 }
  0x15   :  { %v38_v6 = vunpack.c.0.s8 %v37_v2  ;;  %s86_s24 = scalar_lea.vmem %s53_s0, 64  ;;  %p91_p9 = scmp.lt.s32.totalorder %s53_s0, %s53_s0 }
  0x16   :  { %v29_v4 = vsub.s32 0, %v28_v3  ;;  %v33_v5 = vsub.s32 1, %v28_v3  ;;  %p87_p8 = scmp.ne.s32.totalorder %s53_s0, %s86_s24  ;;  %p92_p10 = scmp.lt.s32.totalorder %s86_s24, %s86_s24 }
  0x17   :  { %v41_v10 = vsub.s32 %v38_v6, %v28_v3 }
  0x18   :  { %v30_v8 = vrot.slane %v25_v7, %v29_v4  ;;  %v34_v9 = vrot.slane %v25_v7, %v33_v5  ;;  %p93_p11 = por %p92_p10, %p91_p9 }
  0x1a   :  { %v35_v11 = vcombine.low %v30_v8, %v34_v9  ;;  %p94_p12 = pnand %p93_p11, %p87_p8 }
  0x1c   :  { %v42_v13 = vrot.slane %v35_v11, %v41_v10 }
  0x1e   :  { %v44_v14 = vadd.f32 %v42_v13, %v24_v12 }
  0x20   :  { %45 = vst [vmem:[#allocation5] sm:$0xf] %v44_v14 }
  0x21   :  { %97 = shalt.err (!%p94_p12)
}
  0x22   :  { %s98_s26 = scalar_lea.hbm %s159_s2, 64 }
  0x23   :  { %p99_p13 = scmp.ne.s32.totalorder %s159_s2, %s98_s26  ;;  %p102_p0 = scmp.lt.u32.totalorder %s98_s26, %s159_s2 }
  0x25   :  { %p104_p1 = pnand %p102_p0, %p99_p13 }
  0x27   :  { %107 = shalt.err (!%p104_p1)
}
  0x28   :  { %55 = dma.vmem_to_hbm [thread:$0]  %s53_s0, 64, %s159_s2, [#allocation4]  }
  0x29   :  { %110 = dma.done.wait [#allocation4], 64  }
  0x2a   :  { %111 = vsyncadd [#allocation4], 4294967232 }
  0x2b   :  { %59 = vsyncpa [#allocation3], 1 }
  0x2c   :  { %60 = vsyncpa [#allocation4], 1 }

</bundles_post_ra>
